<compile_context>
chip_gen: v6e
topology: v6e:2x2x1
jax: 0.10.0
libtpu: 0.0.40
codegen_flags: <defaults>
</compile_context>

<pallas_src>
import jax
import jax.numpy as jnp
from jax.experimental import pallas as pl
from jax.experimental.pallas import tpu as pltpu


def mlp_kernel(x_ref, w1_ref, b1_ref, w2_ref, b2_ref, out_ref):
    """Fused 2-layer MLP; batch laid out along the lane (last) axis.

    x_ref   : (1, N) f32   input, batch in lanes
    w1_ref  : (H, 1) f32   hidden-layer weight (in_features == 1)
    b1_ref  : (H, 1) f32   hidden-layer bias
    w2_ref  : (H, 1) f32   output-layer weight (out_features == 1)
    b2_ref  : (1, 1) f32   output-layer bias
    out_ref : (1, N) f32   output, batch in lanes
    """
    x = x_ref[...]                       # (1, N)
    w1 = w1_ref[...]                     # (H, 1)
    b1 = b1_ref[...]                     # (H, 1)
    w2 = w2_ref[...]                     # (H, 1)
    b2 = b2_ref[0, 0]                    # scalar

    # Hidden layer (K = n_features = 1): outer product on the VPU.
    h = jnp.maximum(w1 * x + b1, 0.0)    # (H, N)

    # Output layer (O = n_output = 1): weighted sublane reduction (XLU).
    y = jnp.sum(w2 * h, axis=0, keepdims=True) + b2   # (1, N)

    out_ref[...] = y.astype(out_ref.dtype)


@jax.jit
def net_forward(x, w1, b1, w2, b2):
    """x: (N, 1); w1: (H, 1); b1: (H,); w2: (1, H); b2: (1,)  ->  (N, 1)."""
    n = x.shape[0]
    h = w1.shape[0]

    # Metadata-only reshapes (no padding, no scatters): batch goes to lanes,
    # every parameter becomes a tiny column vector.
    x_row = x.astype(jnp.float32).reshape(1, n)
    w1_c = w1.astype(jnp.float32).reshape(h, 1)
    b1_c = b1.astype(jnp.float32).reshape(h, 1)
    w2_c = w2.astype(jnp.float32).reshape(h, 1)
    b2_c = b2.astype(jnp.float32).reshape(1, 1)

    vmem = pl.BlockSpec(memory_space=pltpu.MemorySpace.VMEM)

    y_row = pl.pallas_call(
        mlp_kernel,
        out_shape=jax.ShapeDtypeStruct((1, n), jnp.float32),
        in_specs=[vmem, vmem, vmem, vmem, vmem],
        out_specs=vmem,
    )(x_row, w1_c, b1_c, w2_c, b2_c)

    # TODO(synk): if N ever grows large, tile N with a "parallel" 1-D grid
    # (params BlockSpec at a constant block index so they stay resident) to
    # use both v7x TensorCores; size the N tile for v7x's 64 MiB VMEM. If
    # F/H ever reach >=128, switch both layers to jnp.dot on the MXU.
    return y_row.reshape(n, 1).astype(x.dtype)


if __name__ == "__main__":
    # Shapes implied by the reference script: x = linspace(-1,1,100)[:,None],
    # Net(n_features=1, n_hidden=10, n_output=1)
    N, F, H, O = 100, 1, 10, 1

    key = jax.random.PRNGKey(0)
    k1, k2, k3, k4 = jax.random.split(key, 4)

    # Deterministic parameter init (PyTorch Linear stores W as (out, in)).
    w1 = jax.random.normal(k1, (H, F), dtype=jnp.float32) * 0.5
    b1 = jax.random.normal(k2, (H,), dtype=jnp.float32) * 0.1
    w2 = jax.random.normal(k3, (O, H), dtype=jnp.float32) * 0.5
    b2 = jax.random.normal(k4, (O,), dtype=jnp.float32) * 0.1

    x = jnp.linspace(-1.0, 1.0, N, dtype=jnp.float32).reshape(N, 1)

    y = jax.block_until_ready(net_forward(x, w1, b1, w2, b2))

    # Reference check in plain JAX.
    h_ref = jnp.maximum(x @ w1.T + b1, 0.0)
    y_ref = h_ref @ w2.T + b2
    assert y.shape == (N, O)
    assert jnp.allclose(y, y_ref, atol=1e-5, rtol=1e-5)

    print("KERNEL_OK")
</pallas_src>

<mosaic_0001>
module attributes {stable_mosaic.version = 11 : i64} {
  func.func @mlp_kernel(%arg0: memref<1x100xf32, #tpu.memory_space<vmem>>, %arg1: memref<10x1xf32, #tpu.memory_space<vmem>>, %arg2: memref<10x1xf32, #tpu.memory_space<vmem>>, %arg3: memref<10x1xf32, #tpu.memory_space<vmem>>, %arg4: memref<1x1xf32, #tpu.memory_space<vmem>>, %arg5: memref<1x100xf32, #tpu.memory_space<vmem>>) attributes {dimension_semantics = [], scalar_prefetch = 0 : i64, scratch_operands = 0 : i64, tpu.core_type = #tpu.core_type<tc>} {
    %c0 = arith.constant 0 : index
    %c0_0 = arith.constant 0 : index
    %0 = vector.load %arg0[%c0, %c0_0] : memref<1x100xf32, #tpu.memory_space<vmem>>, vector<1x100xf32>
    %c0_1 = arith.constant 0 : index
    %c0_2 = arith.constant 0 : index
    %1 = vector.load %arg1[%c0_1, %c0_2] : memref<10x1xf32, #tpu.memory_space<vmem>>, vector<10x1xf32>
    %c0_3 = arith.constant 0 : index
    %c0_4 = arith.constant 0 : index
    %2 = vector.load %arg2[%c0_3, %c0_4] : memref<10x1xf32, #tpu.memory_space<vmem>>, vector<10x1xf32>
    %c0_5 = arith.constant 0 : index
    %c0_6 = arith.constant 0 : index
    %3 = vector.load %arg3[%c0_5, %c0_6] : memref<10x1xf32, #tpu.memory_space<vmem>>, vector<10x1xf32>
    %c0_7 = arith.constant 0 : index
    %c0_8 = arith.constant 0 : index
    %4 = vector.load %arg4[%c0_7, %c0_8] : memref<1x1xf32, #tpu.memory_space<vmem>>, vector<1x1xf32>
    %5 = vector.extract %4[0, 0] : f32 from vector<1x1xf32>
    %6 = vector.broadcast %1 : vector<10x1xf32> to vector<10x100xf32>
    %7 = vector.broadcast %0 : vector<1x100xf32> to vector<10x100xf32>
    %8 = arith.mulf %6, %7 : vector<10x100xf32>
    %9 = vector.broadcast %2 : vector<10x1xf32> to vector<10x100xf32>
    %10 = arith.addf %8, %9 : vector<10x100xf32>
    %cst = arith.constant 0.000000e+00 : f32
    %11 = vector.broadcast %cst : f32 to vector<10x100xf32>
    %12 = arith.maximumf %10, %11 : vector<10x100xf32>
    %13 = vector.broadcast %3 : vector<10x1xf32> to vector<10x100xf32>
    %14 = arith.mulf %13, %12 : vector<10x100xf32>
    %cst_9 = arith.constant dense<0.000000e+00> : vector<100xf32>
    %15 = vector.multi_reduction <add>, %14, %cst_9 [0] : vector<10x100xf32> to vector<100xf32>
    %16 = vector.shape_cast %15 : vector<100xf32> to vector<1x100xf32>
    %17 = vector.broadcast %5 : f32 to vector<1x100xf32>
    %18 = arith.addf %16, %17 : vector<1x100xf32>
    %c0_10 = arith.constant 0 : index
    %c0_11 = arith.constant 0 : index
    %19 = vector.load %arg5[%c0_10, %c0_11] : memref<1x100xf32, #tpu.memory_space<vmem>>, vector<1x100xf32>
    tpu.vector_store %arg5[%c0_10, %c0_11], %18 {strides = array<i32>} : memref<1x100xf32, #tpu.memory_space<vmem>>, vector<1x100xf32>,
    return
  }
}

</mosaic_0001>

<bundles_post_ra>
// kernel: net_forward.1
= control target key start
LH: loop header
LB: loop body
LE: loop exit
PB: predicated region body
PF: predicated region fallthrough
CT: control target
= control target key end

     0   :  { %s193_s0 = inlined_call_operand.vmem [shape: f32[1,100], index: 0, kind: input, shape index: {}]   ;;  %s194_s1 = inlined_call_operand.vmem [shape: f32[10,1], index: 1, kind: input, shape index: {}]   ;;  %s195_s2 = inlined_call_operand.vmem [shape: f32[10,1], index: 2, kind: input, shape index: {}]   ;;  %s196_s3 = inlined_call_operand.vmem [shape: f32[10,1], index: 3, kind: input, shape index: {}]   ;;  %s197_s4 = inlined_call_operand.<no memory space> [shape: f32[1,1], index: 4, kind: input, shape index: {}]   ;;  %s198_s5 = inlined_call_operand.hbm [shape: f32[1,100], index: 5, kind: output, shape index: {}]  }
   0x1   :  { %v10_v0 = vstv %s197_s4 }
   0x2   :  { %11 = vst [vmem:[#allocation2] sm:$0x1] %v10_v0 }
   0x3   :  { %v26_v1 = vld [vmem:[%s195_s2] sm:$0xff]  ;;  %v134_v3 = vmov 0  }
   0x4   :  { %v24_v2 = vld [vmem:[%s194_s1] sm:$0xff]  ;;  %111 = vset.pattern.permute.xlu1 %v134_v3  ;;  %110 = vset.pattern.permute.xlu0 %v134_v3 }
   0x5   :  { %52 = vperm.xlu1 %111, %v26_v1   ;;  %34 = vperm.xlu0 %110, %v24_v2  }
   0x9   :  { %v30_v4 = vld [vmem:[#allocation2] sm:$0x1] }
   0xa   :  { %12 = vsyncpa [#allocation4], 0  ;;  %v27_v5 = vld [vmem:[%s195_s2 + $0x8] sm:$0x3]  ;;  %106 = vpush %v30_v4  ;;  %v28_v8 = vld [vmem:[%s196_s3] sm:$0xff]  ;;  %vm78_vm0 = vcmask 812032  }
   0xb   :  { %v25_v6 = vld [vmem:[%s194_s1 + $0x8] sm:$0x3]  ;;  %57 = vperm.xlu1 %111, %v27_v5   ;;  %v105_v9 = vld [vmem:[%s193_s0] ss:$0 sm:$0xff]  ;;  %vm76_vm1 = vcmask 818176   ;;  %s135_s1 = smov [#allocation3]  }
   0xc   :  { %39 = vperm.xlu0 %110, %v25_v6   ;;  %v29_v7 = vld [vmem:[%s196_s3 + $0x8] sm:$0x3]  ;;  %s97_s2 = sshll.u32 %s135_s1, 4  ;;  %vm89_vm2 = vcmask 811008   ;;  %s98_s2 = int_to_ptr.vmem [resolvable:$true] %s97_s2 }
   0xd   :  { %s112_s3 = scalar_lea.vmem %s98_s2, 16  ;;  %s116_s8 = scalar_lea.vmem %s98_s2, 32 }
   0xe   :  { %p113_p0 = scmp.ne.s32.totalorder %s98_s2, %s112_s3  ;;  %p117_p1 = scmp.lt.s32.totalorder %s98_s2, %s98_s2 }
   0xf   :  { %71 = vperm.xlu1 %111, %v29_v7   ;;  %p118_p2 = scmp.lt.s32.totalorder %s116_s8, %s112_s3 }
  0x10   :  { %66 = vperm.xlu0 %110, %v28_v8  }
  0x11   :  { %p119_p3 = por %p118_p2, %p117_p1 }
  0x13   :  { %p120_p4 = pnand %p119_p3, %p113_p0 }
  0x3b   :  { %s107_s0 = spop %106 }
  0x3c   :  { %v87_v32 = vstv %s107_s0 }
  0x80   :  { %v53_v10 = vpop.permute.xlu1 %52  ;;  %v35_v11 = vpop.permute.xlu0 %34 }
  0x81   :  { %v48_v12 = vmul.f32 %v105_v9, %v35_v11 }
  0x83   :  { %v60_v13 = vadd.f32 %v53_v10, %v48_v12 }
  0x85   :  { %v62_v18 = vmax.f32 %v60_v13, 0.0 }
  0x86   :  { %v58_v14 = vpop.permute.xlu1 %57 }
  0x87   :  { %v40_v15 = vpop.permute.xlu0 %39 }
  0x88   :  { %v49_v16 = vmul.f32 %v105_v9, %v40_v15 }
  0x8a   :  { %v61_v17 = vadd.f32 %v58_v14, %v49_v16  ;;  %v72_v22 = vpop.permute.xlu1 %71 }
  0x8b   :  { %v67_v19 = vpop.permute.xlu0 %66 }
  0x8c   :  { %v63_v20 = vmax.f32 %v61_v17, 0.0  ;;  %v74_v21 = vmul.f32 %v67_v19, %v62_v18 }
  0x8e   :  { %v75_v23 = vmul.f32 %v72_v22, %v63_v20  ;;  %v77_v25 = vsel %vm76_vm1, %v74_v21, 0.0 }
  0x90   :  { %v79_v24 = vsel %vm78_vm0, %v75_v23, 0.0 }
  0x91   :  { %v80_v26 = vadd.f32 %v79_v24, %v77_v25 }
  0x93   :  { %v81_v27 = vrot.slane %v80_v26, 4 }
  0x95   :  { %v82_v28 = vadd.f32 %v81_v27, %v80_v26 }
  0x97   :  { %v83_v29 = vrot.slane %v82_v28, 2 }
  0x99   :  { %v84_v30 = vadd.f32 %v83_v29, %v82_v28 }
  0x9b   :  { %v85_v31 = vrot.slane %v84_v30, 1 }
  0x9d   :  { %v86_v33 = vadd.f32 %v85_v31, %v84_v30 }
  0x9f   :  { %v88_v34 = vadd.f32 %v87_v32, %v86_v33 }
  0xa1   :  { %90 = vst.msk [vmem:[#allocation3] sm:$0x1] %vm89_vm2, %v88_v34 }
  0xa2   :  { %123 = shalt.err (!%p120_p4)
}
  0xa3   :  { %100 = dma.vmem_to_hbm [thread:$0]  %s98_s2, 16, %s198_s5, [#allocation4]  }
  0xa4   :  { %132 = dma.done.wait [#allocation4], 16  }
  0xa5   :  { %133 = vsyncadd [#allocation4], 4294967280 }
  0xa6   :  { %104 = vsyncpa [#allocation4], 1 }

</bundles_post_ra>
